<compile_context>
chip_gen: v7x
topology: tpu7x:2x2x1
jax: 0.10.0
libtpu: 0.0.40
codegen_flags: <defaults>
</compile_context>

<pallas_src>
import functools
import math

import jax
import jax.numpy as jnp
from jax.experimental import pallas as pl
from jax.experimental.pallas import tpu as pltpu


def _round_up(x, m):
    return (x + m - 1) // m * m


def _decoder_kernel(n_layers, compute_dtype, *refs):
    """Fused MLP: (Linear + LeakyReLU(0.2)) * (n_layers - 1) + Linear.

    refs = (x_ref, w0, b0, w1, b1, ..., w_{L-1}, b_{L-1}, out_ref)
    x_ref is a (TM, n_latent) batch tile; weights/biases are full arrays kept
    resident in VMEM across grid steps (constant index maps).
    """
    x_ref = refs[0]
    out_ref = refs[-1]
    param_refs = refs[1:-1]

    h = x_ref[...].astype(jnp.float32)
    for layer in range(n_layers):
        w_ref = param_refs[2 * layer]
        b_ref = param_refs[2 * layer + 1]
        # bf16 (or f32) matmul inputs, f32 accumulation on the MXU.
        y = jnp.dot(h.astype(compute_dtype), w_ref[...],
                    preferred_element_type=jnp.float32)
        y = y + b_ref[...].astype(jnp.float32)
        if layer != n_layers - 1:  # no activation after the output layer
            y = jnp.maximum(y, 0.2 * y)  # LeakyReLU(0.2) as a single vmax
        h = y
    out_ref[...] = h.astype(out_ref.dtype)


def decoder_forward(x, params, im_size, square=True,
                    compute_dtype=jnp.bfloat16, max_batch_tile=256):
    """params: list of (W, b) with W shape (in, out), b shape (1, out)."""
    n_layers = len(params)
    batch, n_latent = x.shape

    side = None
    if square:
        side = int(round(math.sqrt(im_size)))
        if side * side != im_size:
            raise ValueError(
                f"square=True requires im_size={im_size} to be a perfect square")

    # Batch tile: multiple of 8 (f32 sublanes), capped for MXU/VMEM sizing.
    tm = min(max_batch_tile, _round_up(batch, 8))
    padded_b = _round_up(batch, tm)
    x = x.astype(jnp.float32)
    if padded_b != batch:
        x = jnp.pad(x, ((0, padded_b - batch), (0, 0)))

    # Pre-cast matmul weights to the compute dtype (halves HBM/VMEM for bf16);
    # biases stay f32 since bias-add/activation run in f32.
    flat_params = []
    layer_dims = []
    for w, b in params:
        layer_dims.append(w.shape)
        flat_params.append(jnp.asarray(w, compute_dtype))
        flat_params.append(jnp.asarray(b, jnp.float32))

    grid = (padded_b // tm,)

    in_specs = [pl.BlockSpec((tm, n_latent), lambda i: (i, 0))]
    for p in flat_params:
        # Constant index map: weights/biases stay VMEM-resident across steps.
        in_specs.append(pl.BlockSpec(p.shape, lambda i: (0, 0)))
    out_spec = pl.BlockSpec((tm, im_size), lambda i: (i, 0))

    # Cost estimate for XLA's scheduler.
    flops = 2 * padded_b * sum(int(din) * int(dout) for din, dout in layer_dims)
    weight_bytes = sum(int(p.size) * p.dtype.itemsize for p in flat_params)
    bytes_accessed = (int(x.size) * x.dtype.itemsize
                      + padded_b * im_size * 4
                      + weight_bytes)
    cost = pl.CostEstimate(flops=flops, transcendentals=0,
                           bytes_accessed=bytes_accessed)

    # VMEM budget: resident weights + double-buffered x/out tiles + headroom.
    tile_bytes = tm * n_latent * 4 + tm * im_size * 4
    needed = 2 * (weight_bytes + tile_bytes) + (4 << 20)
    vmem_limit = int(min(64 << 20, max(32 << 20, needed)))  # 64 MiB cap (v7x)

    compiler_params = pltpu.CompilerParams(
        dimension_semantics=("parallel",),  # batch axis -> both TCs on v7x
        vmem_limit_bytes=vmem_limit,
    )

    kernel = functools.partial(_decoder_kernel, n_layers, compute_dtype)
    out_flat = pl.pallas_call(
        kernel,
        out_shape=jax.ShapeDtypeStruct((padded_b, im_size), jnp.float32),
        grid=grid,
        in_specs=in_specs,
        out_specs=out_spec,
        compiler_params=compiler_params,
        cost_estimate=cost,
    )(x, *flat_params)

    out_flat = out_flat[:batch]
    if square:
        return out_flat.reshape(batch, 1, side, side)
    return out_flat


def init_decoder_params(key, im_size, n_latent, n_hidden, nn_width):
    """Deterministic parameter init matching Decoder(taper=False) shapes."""
    dims = [n_latent] + [nn_width] * (n_hidden + 1) + [im_size]
    params = []
    for i in range(len(dims) - 1):
        key, kw, kb = jax.random.split(key, 3)
        fan_in = dims[i]
        bound = 1.0 / math.sqrt(fan_in)
        w = jax.random.uniform(kw, (dims[i], dims[i + 1]), jnp.float32, -bound, bound)
        b = jax.random.uniform(kb, (1, dims[i + 1]), jnp.float32, -bound, bound)
        params.append((w, b))
    return params


def reference_forward(x, params, im_size, square=True):
    """Plain-JAX f32 reference of the same forward pass (module semantics)."""
    h = x
    for i, (w, b) in enumerate(params):
        h = h @ w + b
        if i != len(params) - 1:
            h = jnp.where(h > 0, h, 0.2 * h)
    if square:
        side = int(round(math.sqrt(im_size)))
        return h.reshape(x.shape[0], 1, side, side)
    return h


if __name__ == "__main__":
    # Small shapes consistent with the module.
    batch = 2
    n_latent = 8
    n_hidden = 2
    nn_width = 32
    im_size = 256  # 16 x 16 image, square=True

    key = jax.random.PRNGKey(0)
    key, kx = jax.random.split(key)
    x = jax.random.normal(kx, (batch, n_latent), jnp.float32)
    params = init_decoder_params(key, im_size, n_latent, n_hidden, nn_width)

    ref = reference_forward(x, params, im_size, square=True)

    # Exact-semantics path (f32 matmuls) -- tight tolerance vs PyTorch math.
    out_f32 = decoder_forward(x, params, im_size, square=True,
                              compute_dtype=jnp.float32)
    out_f32 = jax.block_until_ready(out_f32)
    assert out_f32.shape == (batch, 1, 16, 16), out_f32.shape
    assert jnp.allclose(out_f32, ref, atol=1e-5, rtol=1e-5), "f32 mismatch vs reference"

    # Fast path (bf16 matmul inputs, f32 accumulation) -- loose tolerance.
    out_bf16 = decoder_forward(x, params, im_size, square=True,
                               compute_dtype=jnp.bfloat16)
    out_bf16 = jax.block_until_ready(out_bf16)
    assert out_bf16.shape == (batch, 1, 16, 16), out_bf16.shape
    assert jnp.allclose(out_bf16, ref, atol=5e-2, rtol=5e-2), "bf16 mismatch vs reference"

    print("KERNEL_OK")
</pallas_src>

<mosaic_0001>
module attributes {stable_mosaic.version = 11 : i64} {
  func.func @_decoder_kernel(%arg0: i32, %arg1: memref<8x8xf32, #tpu.memory_space<vmem>>, %arg2: memref<8x32xf32, #tpu.memory_space<vmem>>, %arg3: memref<1x32xf32, #tpu.memory_space<vmem>>, %arg4: memref<32x32xf32, #tpu.memory_space<vmem>>, %arg5: memref<1x32xf32, #tpu.memory_space<vmem>>, %arg6: memref<32x32xf32, #tpu.memory_space<vmem>>, %arg7: memref<1x32xf32, #tpu.memory_space<vmem>>, %arg8: memref<32x256xf32, #tpu.memory_space<vmem>>, %arg9: memref<1x256xf32, #tpu.memory_space<vmem>>, %arg10: memref<8x256xf32, #tpu.memory_space<vmem>>) attributes {dimension_semantics = [#tpu.dimension_semantics<parallel>], iteration_bounds = array<i64: 1>, scalar_prefetch = 0 : i64, scratch_operands = 0 : i64, tpu.core_type = #tpu.core_type<tc>, window_params = [{transform_indices = @transform_0, window_bounds = array<i64: 8, 8>}, {pipeline_mode = #tpu.pipeline_mode<synchronous>, transform_indices = @transform_1, window_bounds = array<i64: 8, 32>}, {pipeline_mode = #tpu.pipeline_mode<synchronous>, transform_indices = @transform_2, window_bounds = array<i64: 1, 32>}, {pipeline_mode = #tpu.pipeline_mode<synchronous>, transform_indices = @transform_3, window_bounds = array<i64: 32, 32>}, {pipeline_mode = #tpu.pipeline_mode<synchronous>, transform_indices = @transform_4, window_bounds = array<i64: 1, 32>}, {pipeline_mode = #tpu.pipeline_mode<synchronous>, transform_indices = @transform_5, window_bounds = array<i64: 32, 32>}, {pipeline_mode = #tpu.pipeline_mode<synchronous>, transform_indices = @transform_6, window_bounds = array<i64: 1, 32>}, {pipeline_mode = #tpu.pipeline_mode<synchronous>, transform_indices = @transform_7, window_bounds = array<i64: 32, 256>}, {pipeline_mode = #tpu.pipeline_mode<synchronous>, transform_indices = @transform_8, window_bounds = array<i64: 1, 256>}, {transform_indices = @transform_9, window_bounds = array<i64: 8, 256>}]} {
    %c0 = arith.constant 0 : index
    %c0_0 = arith.constant 0 : index
    %0 = vector.load %arg1[%c0, %c0_0] : memref<8x8xf32, #tpu.memory_space<vmem>>, vector<8x8xf32>
    %c0_1 = arith.constant 0 : index
    %c0_2 = arith.constant 0 : index
    %1 = vector.load %arg2[%c0_1, %c0_2] : memref<8x32xf32, #tpu.memory_space<vmem>>, vector<8x32xf32>
    %cst = arith.constant dense<0.000000e+00> : vector<8x32xf32>
    %2 = tpu.matmul %0, %1, %cst {dimension_numbers = #tpu.dot_dimension_numbers<[1], [0], [0], [1], [0, 0, 1, 1], [], []>} : vector<8x8xf32>, vector<8x32xf32>, vector<8x32xf32> -> vector<8x32xf32>
    %c0_3 = arith.constant 0 : index
    %c0_4 = arith.constant 0 : index
    %3 = vector.load %arg3[%c0_3, %c0_4] : memref<1x32xf32, #tpu.memory_space<vmem>>, vector<1x32xf32>
    %4 = vector.broadcast %3 : vector<1x32xf32> to vector<8x32xf32>
    %5 = arith.addf %2, %4 : vector<8x32xf32>
    %cst_5 = arith.constant 2.000000e-01 : f32
    %6 = vector.broadcast %cst_5 : f32 to vector<8x32xf32>
    %7 = arith.mulf %6, %5 : vector<8x32xf32>
    %8 = arith.maximumf %5, %7 : vector<8x32xf32>
    %c0_6 = arith.constant 0 : index
    %c0_7 = arith.constant 0 : index
    %9 = vector.load %arg4[%c0_6, %c0_7] : memref<32x32xf32, #tpu.memory_space<vmem>>, vector<32x32xf32>
    %cst_8 = arith.constant dense<0.000000e+00> : vector<8x32xf32>
    %10 = tpu.matmul %8, %9, %cst_8 {dimension_numbers = #tpu.dot_dimension_numbers<[1], [0], [0], [1], [0, 0, 1, 1], [], []>} : vector<8x32xf32>, vector<32x32xf32>, vector<8x32xf32> -> vector<8x32xf32>
    %c0_9 = arith.constant 0 : index
    %c0_10 = arith.constant 0 : index
    %11 = vector.load %arg5[%c0_9, %c0_10] : memref<1x32xf32, #tpu.memory_space<vmem>>, vector<1x32xf32>
    %12 = vector.broadcast %11 : vector<1x32xf32> to vector<8x32xf32>
    %13 = arith.addf %10, %12 : vector<8x32xf32>
    %cst_11 = arith.constant 2.000000e-01 : f32
    %14 = vector.broadcast %cst_11 : f32 to vector<8x32xf32>
    %15 = arith.mulf %14, %13 : vector<8x32xf32>
    %16 = arith.maximumf %13, %15 : vector<8x32xf32>
    %c0_12 = arith.constant 0 : index
    %c0_13 = arith.constant 0 : index
    %17 = vector.load %arg6[%c0_12, %c0_13] : memref<32x32xf32, #tpu.memory_space<vmem>>, vector<32x32xf32>
    %cst_14 = arith.constant dense<0.000000e+00> : vector<8x32xf32>
    %18 = tpu.matmul %16, %17, %cst_14 {dimension_numbers = #tpu.dot_dimension_numbers<[1], [0], [0], [1], [0, 0, 1, 1], [], []>} : vector<8x32xf32>, vector<32x32xf32>, vector<8x32xf32> -> vector<8x32xf32>
    %c0_15 = arith.constant 0 : index
    %c0_16 = arith.constant 0 : index
    %19 = vector.load %arg7[%c0_15, %c0_16] : memref<1x32xf32, #tpu.memory_space<vmem>>, vector<1x32xf32>
    %20 = vector.broadcast %19 : vector<1x32xf32> to vector<8x32xf32>
    %21 = arith.addf %18, %20 : vector<8x32xf32>
    %cst_17 = arith.constant 2.000000e-01 : f32
    %22 = vector.broadcast %cst_17 : f32 to vector<8x32xf32>
    %23 = arith.mulf %22, %21 : vector<8x32xf32>
    %24 = arith.maximumf %21, %23 : vector<8x32xf32>
    %c0_18 = arith.constant 0 : index
    %c0_19 = arith.constant 0 : index
    %25 = vector.load %arg8[%c0_18, %c0_19] : memref<32x256xf32, #tpu.memory_space<vmem>>, vector<32x256xf32>
    %cst_20 = arith.constant dense<0.000000e+00> : vector<8x256xf32>
    %26 = tpu.matmul %24, %25, %cst_20 {dimension_numbers = #tpu.dot_dimension_numbers<[1], [0], [0], [1], [0, 0, 1, 1], [], []>} : vector<8x32xf32>, vector<32x256xf32>, vector<8x256xf32> -> vector<8x256xf32>
    %c0_21 = arith.constant 0 : index
    %c0_22 = arith.constant 0 : index
    %27 = vector.load %arg9[%c0_21, %c0_22] : memref<1x256xf32, #tpu.memory_space<vmem>>, vector<1x256xf32>
    %28 = vector.broadcast %27 : vector<1x256xf32> to vector<8x256xf32>
    %29 = arith.addf %26, %28 : vector<8x256xf32>
    %c0_23 = arith.constant 0 : index
    %c0_24 = arith.constant 0 : index
    %30 = vector.load %arg10[%c0_23, %c0_24] : memref<8x256xf32, #tpu.memory_space<vmem>>, vector<8x256xf32>
    tpu.vector_store %arg10[%c0_23, %c0_24], %29 {strides = array<i32>} : memref<8x256xf32, #tpu.memory_space<vmem>>, vector<8x256xf32>,
    return
  }
  func.func @transform_0(%arg0: i32) -> (i32, i32) {
    %c0_i32 = arith.constant 0 : i32
    %c0_i32_0 = arith.constant 0 : i32
    return %arg0, %c0_i32 : i32, i32
  }
  func.func @transform_1(%arg0: i32) -> (i32, i32) {
    %c0_i32 = arith.constant 0 : i32
    %c0_i32_0 = arith.constant 0 : i32
    %c0_i32_1 = arith.constant 0 : i32
    return %c0_i32, %c0_i32_0 : i32, i32
  }
  func.func @transform_2(%arg0: i32) -> (i32, i32) {
    %c0_i32 = arith.constant 0 : i32
    %c0_i32_0 = arith.constant 0 : i32
    %c0_i32_1 = arith.constant 0 : i32
    return %c0_i32, %c0_i32_0 : i32, i32
  }
  func.func @transform_3(%arg0: i32) -> (i32, i32) {
    %c0_i32 = arith.constant 0 : i32
    %c0_i32_0 = arith.constant 0 : i32
    %c0_i32_1 = arith.constant 0 : i32
    return %c0_i32, %c0_i32_0 : i32, i32
  }
  func.func @transform_4(%arg0: i32) -> (i32, i32) {
    %c0_i32 = arith.constant 0 : i32
    %c0_i32_0 = arith.constant 0 : i32
    %c0_i32_1 = arith.constant 0 : i32
    return %c0_i32, %c0_i32_0 : i32, i32
  }
  func.func @transform_5(%arg0: i32) -> (i32, i32) {
    %c0_i32 = arith.constant 0 : i32
    %c0_i32_0 = arith.constant 0 : i32
    %c0_i32_1 = arith.constant 0 : i32
    return %c0_i32, %c0_i32_0 : i32, i32
  }
  func.func @transform_6(%arg0: i32) -> (i32, i32) {
    %c0_i32 = arith.constant 0 : i32
    %c0_i32_0 = arith.constant 0 : i32
    %c0_i32_1 = arith.constant 0 : i32
    return %c0_i32, %c0_i32_0 : i32, i32
  }
  func.func @transform_7(%arg0: i32) -> (i32, i32) {
    %c0_i32 = arith.constant 0 : i32
    %c0_i32_0 = arith.constant 0 : i32
    %c0_i32_1 = arith.constant 0 : i32
    return %c0_i32, %c0_i32_0 : i32, i32
  }
  func.func @transform_8(%arg0: i32) -> (i32, i32) {
    %c0_i32 = arith.constant 0 : i32
    %c0_i32_0 = arith.constant 0 : i32
    %c0_i32_1 = arith.constant 0 : i32
    return %c0_i32, %c0_i32_0 : i32, i32
  }
  func.func @transform_9(%arg0: i32) -> (i32, i32) {
    %c0_i32 = arith.constant 0 : i32
    %c0_i32_0 = arith.constant 0 : i32
    return %arg0, %c0_i32 : i32, i32
  }
}

</mosaic_0001>

<bundles_post_ra>
// kernel: tpu_custom_call.1
= control target key start
LH: loop header
LB: loop body
LE: loop exit
PB: predicated region body
PF: predicated region fallthrough
CT: control target
= control target key end

     0   :  { %14 = vsyncpa [#allocation3], 0  ;;  %s843_s0 = inlined_call_operand.hbm [shape: f32[8,8], index: 0, kind: input, shape index: {}]   ;;  %s844_s1 = inlined_call_operand.hbm [shape: f32[8,32], index: 1, kind: input, shape index: {}]   ;;  %s845_s2 = inlined_call_operand.vmem [shape: f32[1,32], index: 2, kind: input, shape index: {}]   ;;  %s846_s3 = inlined_call_operand.hbm [shape: f32[32,32], index: 3, kind: input, shape index: {}]   ;;  %s847_s4 = inlined_call_operand.vmem [shape: f32[1,32], index: 4, kind: input, shape index: {}]   ;;  %s848_s5 = inlined_call_operand.hbm [shape: f32[32,32], index: 5, kind: input, shape index: {}]   ;;  %s849_s6 = inlined_call_operand.vmem [shape: f32[1,32], index: 6, kind: input, shape index: {}]   ;;  %s850_s7 = inlined_call_operand.hbm [shape: f32[32,256], index: 7, kind: input, shape index: {}]   ;;  %s851_s8 = inlined_call_operand.vmem [shape: f32[1,256], index: 8, kind: input, shape index: {}]   ;;  %s852_s9 = inlined_call_operand.hbm [shape: f32[8,256], index: 9, kind: output, shape index: {}]  }
   0x1   :  { %15 = vsyncpa [#allocation6], 0 }
   0x2   :  { %16 = vsyncpa [#allocation9], 0 }
   0x3   :  { %17 = vsyncpa [#allocation4], 0  ;;  %s687_s30 = smov [#allocation5]   ;;  %s547_s13 = scalar_lea.hbm %s844_s1, 128 }
   0x4   :  { %s34_s10 = sshll.u32 %s687_s30, 4  ;;  %p548_p0 = scmp.ne.s32.totalorder %s844_s1, %s547_s13  ;;  %s35_s10 = int_to_ptr.vmem [resolvable:$true] %s34_s10 }
   0x5   :  { %p551_p1 = scmp.lt.u32.totalorder %s547_s13, %s844_s1 }
   0x7   :  { %p553_p2 = pnand %p551_p1, %p548_p0 }
   0x9   :  { %556 = shalt.err (!%p553_p2)
}
   0xa   :  { %s557_s18 = scalar_lea.vmem %s35_s10, 128  ;;  %p562_p4 = scmp.lt.s32.totalorder %s35_s10, %s35_s10 }
   0xb   :  { %p558_p3 = scmp.ne.s32.totalorder %s35_s10, %s557_s18  ;;  %p563_p5 = scmp.lt.s32.totalorder %s557_s18, %s557_s18 }
   0xd   :  { %p564_p6 = por %p563_p5, %p562_p4 }
   0xf   :  { %p565_p7 = pnand %p564_p6, %p558_p3 }
  0x11   :  { %568 = shalt.err (!%p565_p7)
}
  0x12   :  { %37 = dma.hbm_to_vmem [thread:$0]  %s844_s1, 128, %s35_s10, [#allocation6]  }
  0x13   :  { %s688_s21 = smov [#allocation8]   ;;  %s689_s23 = smov [#allocation2]  }
  0x14   :  { %s59_s22 = sshll.u32 %s688_s21, 4  ;;  %s24_s24 = sshll.u32 %s689_s23, 4  ;;  %s60_s22 = int_to_ptr.vmem [resolvable:$true] %s59_s22  ;;  %s25_s24 = int_to_ptr.vmem [resolvable:$true] %s24_s24 }
  0x15   :  { %s569_s27 = scalar_lea.hbm %s848_s5, 512 }
  0x16   :  { %p570_p8 = scmp.ne.s32.totalorder %s848_s5, %s569_s27  ;;  %p573_p9 = scmp.lt.u32.totalorder %s569_s27, %s848_s5 }
  0x18   :  { %p575_p10 = pnand %p573_p9, %p570_p8 }
  0x1a   :  { %578 = shalt.err (!%p575_p10)
}
  0x1b   :  { %s579_s1 = scalar_lea.vmem %s60_s22, 512  ;;  %p584_p12 = scmp.lt.s32.totalorder %s60_s22, %s60_s22 }
  0x1c   :  { %p580_p11 = scmp.ne.s32.totalorder %s60_s22, %s579_s1  ;;  %p585_p13 = scmp.lt.s32.totalorder %s579_s1, %s579_s1 }
  0x1e   :  { %p586_p0 = por %p585_p13, %p584_p12 }
  0x20   :  { %p587_p1 = pnand %p586_p0, %p580_p11 }
  0x22   :  { %590 = shalt.err (!%p587_p1)
}
  0x23   :  { %s690_s10 = smov 128   ;;  %s691_s12 = smov 8  }
  0x24   :  { %65 = dma.hbm_to_vmem [thread:$0]  %s848_s5, 512, %s60_s22, [#allocation9], %s690_s10, %s690_s10, %s691_s12  }
  0x25   :  { %s591_s17 = scalar_lea.hbm %s843_s0, 128 }
  0x26   :  { %p592_p2 = scmp.ne.s32.totalorder %s843_s0, %s591_s17  ;;  %p595_p3 = scmp.lt.u32.totalorder %s591_s17, %s843_s0 }
  0x28   :  { %p597_p4 = pnand %p595_p3, %p592_p2 }
  0x2a   :  { %600 = shalt.err (!%p597_p4)
}
  0x2b   :  { %s601_s23 = scalar_lea.vmem %s25_s24, 128  ;;  %p606_p6 = scmp.lt.s32.totalorder %s25_s24, %s25_s24 }
  0x2c   :  { %p602_p5 = scmp.ne.s32.totalorder %s25_s24, %s601_s23  ;;  %p607_p7 = scmp.lt.s32.totalorder %s601_s23, %s601_s23 }
  0x2e   :  { %p608_p8 = por %p607_p7, %p606_p6 }
  0x30   :  { %p609_p9 = pnand %p608_p8, %p602_p5 }
  0x32   :  { %612 = shalt.err (!%p609_p9)
}
  0x33   :  { %27 = dma.hbm_to_vmem [thread:$0]  %s843_s0, 128, %s25_s24, [#allocation3]  }
  0x34   :  { %s692_s25 = smov [#allocation7]   ;;  %s693_s27 = smov [#allocation10]  }
  0x35   :  { %s45_s26 = sshll.u32 %s692_s25, 4  ;;  %s73_s28 = sshll.u32 %s693_s27, 4  ;;  %s46_s26 = int_to_ptr.vmem [resolvable:$true] %s45_s26  ;;  %s74_s28 = int_to_ptr.vmem [resolvable:$true] %s73_s28 }
  0x36   :  { %s613_s11 = scalar_lea.hbm %s846_s3, 512 }
  0x37   :  { %p614_p10 = scmp.ne.s32.totalorder %s846_s3, %s613_s11  ;;  %p617_p11 = scmp.lt.u32.totalorder %s613_s11, %s846_s3 }
  0x39   :  { %p619_p12 = pnand %p617_p11, %p614_p10 }
  0x3b   :  { %622 = shalt.err (!%p619_p12)
}
  0x3c   :  { %s623_s0 = scalar_lea.vmem %s46_s26, 512  ;;  %p628_p0 = scmp.lt.s32.totalorder %s46_s26, %s46_s26 }
  0x3d   :  { %p624_p13 = scmp.ne.s32.totalorder %s46_s26, %s623_s0  ;;  %p629_p1 = scmp.lt.s32.totalorder %s623_s0, %s623_s0 }
  0x3f   :  { %p630_p2 = por %p629_p1, %p628_p0 }
  0x41   :  { %p631_p3 = pnand %p630_p2, %p624_p13 }
  0x43   :  { %634 = shalt.err (!%p631_p3)
}
  0x44   :  { %51 = dma.hbm_to_vmem [thread:$0]  %s846_s3, 512, %s46_s26, [#allocation6], %s690_s10, %s690_s10, %s691_s12  }
  0x45   :  { %s635_s19 = scalar_lea.hbm %s850_s7, 1024 }
  0x46   :  { %p636_p4 = scmp.ne.s32.totalorder %s850_s7, %s635_s19  ;;  %p639_p5 = scmp.lt.u32.totalorder %s635_s19, %s850_s7 }
  0x48   :  { %p641_p6 = pnand %p639_p5, %p636_p4 }
  0x4a   :  { %644 = shalt.err (!%p641_p6)
}
  0x4b   :  { %s645_s22 = scalar_lea.vmem %s74_s28, 1024  ;;  %p650_p8 = scmp.lt.s32.totalorder %s74_s28, %s74_s28 }
  0x4c   :  { %p646_p7 = scmp.ne.s32.totalorder %s74_s28, %s645_s22  ;;  %p651_p9 = scmp.lt.s32.totalorder %s645_s22, %s645_s22 }
  0x4e   :  { %p652_p10 = por %p651_p9, %p650_p8 }
  0x50   :  { %p653_p11 = pnand %p652_p10, %p646_p7 }
  0x52   :  { %656 = shalt.err (!%p653_p11)
}
  0x53   :  { %s694_s3 = smov 256   ;;  %s695_s10 = smov 16  }
  0x54   :  { %79 = dma.hbm_to_vmem [thread:$0]  %s850_s7, 1024, %s74_s28, [#allocation9], %s694_s3, %s694_s3, %s695_s10  }
  0x55   :  { %679 = dma.done.wait [#allocation3], 128  }
  0x56   :  { %680 = vsyncadd [#allocation3], 4294967168 }
  0x57   :  { %681 = dma.done.wait [#allocation6], 640  }
  0x58   :  { %682 = vsyncadd [#allocation6], 4294966656 }
  0x59   :  { %683 = dma.done.wait [#allocation9], 1536  }
  0x5a   :  { %684 = vsyncadd [#allocation9], 4294965760  ;;  %v696_v0 = vmov 0.0   ;;  %vm697_vm0 = vmmov 0   ;;  %v698_v1 = vmov 0.0|0.0   ;;  %vm106_vm1 = vcmask 64512  }
  0x5b   :  { %487 = vmatprep.subr.mxu0 %v696_v0  ;;  %489 = vmatprep.mubr.msk.f32.mxu0 %vm697_vm0, %v696_v0  ;;  %v98_v2 = vld [vmem:[#allocation5] sm:$0xff]  ;;  %v97_v3 = vld [vmem:[#allocation2] sm:$0xff]  ;;  %v182_v4 = vld [vmem:[#allocation7] sm:$0xff]  ;;  %vm193_vm2 = vcmask 261120   ;;  %v365_v46 = vlaneseq  ;;  %s699_s11 = smov [#allocation11]  }
  0x5c   :  { %514 = vmatprep.subr.bf16.mxu1 %v698_v1  ;;  %500 = vmatprep.mubr.msk.f32.mxu1 %vm697_vm0, %v696_v0  ;;  %v183_v5 = vld [vmem:[#allocation7 + $0x8] sm:$0xff]  ;;  %v184_v7 = vld [vmem:[#allocation7 + $0x10] sm:$0xff]  ;;  %v185_v8 = vld [vmem:[#allocation7 + $0x18] sm:$0xff]  ;;  %s457_s1 = sshll.u32 %s699_s11, 4  ;;  %s458_s1 = int_to_ptr.vmem [resolvable:$true] %s457_s1 }
  0x5d   :  { %488 = vmatpush3.msra.mxu0 %v98_v2  ;;  %v515_v6 = vpack.c.bf16 %v183_v5, %v182_v4  ;;  %v518_v9 = vpack.c.bf16 %v185_v8, %v184_v7  ;;  %v468_v10 = vld [vmem:[%s845_s2] ss:$0 sm:$0xff]  ;;  %v269_v16 = vld [vmem:[#allocation8] sm:$0xff]  ;;  %v270_v17 = vld [vmem:[#allocation8 + $0x8] sm:$0xff]  ;;  %v366_v47 = vshrl.u32 %v365_v46, 7  ;;  %p662_p13 = scmp.lt.s32.totalorder %s458_s1, %s458_s1 }
  0x5e   :  { %490 = vmatmul.mubr.msk.f32.vlgmr.msra.gmra.mrb[0].mxu0 %vm106_vm1, %v97_v3  ;;  %520 = vmatprep.subr.bf16.mxu0 %v698_v1  ;;  %v521_v18 = vpack.c.bf16 %v270_v17, %v269_v16  ;;  %v271_v19 = vld [vmem:[#allocation8 + $0x10] sm:$0xff]  ;;  %v272_v20 = vld [vmem:[#allocation8 + $0x18] sm:$0xff]  ;;  %v356_v22 = vld [vmem:[#allocation10 + $0x8] sm:$0xff] }
  0x5f   :  { %511 = vmatprep.mubr.msk.f32.mxu0 %vm697_vm0, %v696_v0  ;;  %516 = vmatpush3.bf16.msra.mxu1 %v515_v6  ;;  %v524_v21 = vpack.c.bf16 %v272_v20, %v271_v19  ;;  %v358_v23 = vld [vmem:[#allocation10 + $0x18] sm:$0xff]  ;;  %v470_v25 = vld [vmem:[%s847_s4] ss:$0 sm:$0xff]  ;;  %v355_v31 = vld [vmem:[#allocation10] sm:$0xff]  ;;  %v367_v48 = vsub.s32 0, %v366_v47  ;;  %v371_v50 = vsub.s32 1, %v366_v47 }
  0x60   :  { %517 = vmatprep.subr.bf16.mxu1 %v698_v1  ;;  %522 = vmatpush3.bf16.msra.mxu0 %v521_v18  ;;  %v526_v24 = vpack.c.bf16 %v358_v23, %v356_v22  ;;  %v357_v32 = vld [vmem:[#allocation10 + $0x10] sm:$0xff]  ;;  %v360_v34 = vld [vmem:[#allocation10 + $0x28] sm:$0xff]  ;;  %v362_v35 = vld [vmem:[#allocation10 + $0x38] sm:$0xff] }
  0x61   :  { %523 = vmatprep.subr.bf16.mxu0 %v698_v1  ;;  %v528_v33 = vpack.c.bf16 %v357_v32, %v355_v31  ;;  %v530_v36 = vpack.c.bf16 %v362_v35, %v360_v34  ;;  %v359_v37 = vld [vmem:[#allocation10 + $0x20] sm:$0xff]  ;;  %v361_v38 = vld [vmem:[#allocation10 + $0x30] sm:$0xff] }
  0x62   :  { %v532_v39 = vpack.c.bf16 %v361_v38, %v359_v37  ;;  %v472_v40 = vld [vmem:[%s849_s6] ss:$0 sm:$0xff]  ;;  %s657_s6 = scalar_lea.vmem %s458_s1, 256 }
  0x63   :  { %519 = vmatpush3.bf16.msra.mxu1 %v518_v9  ;;  %v363_v49 = vld [vmem:[%s851_s8] sm:$0x3]  ;;  %p658_p12 = scmp.ne.s32.totalorder %s458_s1, %s657_s6  ;;  %p663_p0 = scmp.lt.s32.totalorder %s657_s6, %s657_s6 }
  0x64   :  { %525 = vmatpush3.bf16.msra.mxu0 %v524_v21  ;;  %527 = vmatprep.subr.bf16.mxu1 %v526_v24  ;;  %v368_v51 = vrot.slane %v363_v49, %v367_v48  ;;  %v372_v52 = vrot.slane %v363_v49, %v371_v50 }
  0x65   :  { %p664_p1 = por %p663_p0, %p662_p13 }
  0x67   :  { %p665_p2 = pnand %p664_p1, %p658_p12 }
 0x131   :  { %v176_v11 = vpop.f32.mrb[0].mxu0 }
 0x132   :  { %v177_v12 = vadd.f32 %v468_v10, %v176_v11  ;;  %v491_v13 = vpop.f32.mrb[1].mxu0 }
 0x134   :  { %v180_v14 = vmul.f32 0.2, %v177_v12 }
 0x136   :  { %v181_v15 = vmax.f32 %v177_v12, %v180_v14 }
 0x138   :  { %501 = vmatmul.mubr.msk.f32.vlgmr.msra.gmra.mrb[0].mxu1 %vm193_vm2, %v181_v15 }
 0x139   :  { %442 = vmatprep.mubr.f32.mxu1 %v696_v0  ;;  %529 = vmatpush1.bf16.msra.mxu1 %v528_v33 }
 0x13a   :  { %531 = vmatprep.subr.bf16.mxu1 %v530_v36 }
 0x13d   :  { %533 = vmatpush1.bf16.msra.mxu1 %v532_v39 }
 0x20b   :  { %v263_v26 = vpop.f32.mrb[0].mxu1 }
 0x20c   :  { %v264_v27 = vadd.f32 %v470_v25, %v263_v26  ;;  %v502_v28 = vpop.f32.mrb[1].mxu1 }
 0x20e   :  { %v267_v29 = vmul.f32 0.2, %v264_v27 }
 0x210   :  { %v268_v30 = vmax.f32 %v264_v27, %v267_v29 }
 0x212   :  { %512 = vmatmul.mubr.msk.f32.vlgmr.msra.gmra.mrb[2].mxu0 %vm193_vm2, %v268_v30 }
 0x2e5   :  { %v349_v41 = vpop.f32.mrb[2].mxu0 }
 0x2e6   :  { %v350_v42 = vadd.f32 %v472_v40, %v349_v41  ;;  %v513_v43 = vpop.f32.mrb[3].mxu0 }
 0x2e8   :  { %v353_v44 = vmul.f32 0.2, %v350_v42 }
 0x2ea   :  { %v354_v45 = vmax.f32 %v350_v42, %v353_v44 }
 0x2ec   :  { %474 = vmatmul.mubr.msk.f32.vlgmr.msra.gmra.mrb[2].mxu1 %vm193_vm2, %v354_v45 }
 0x3bf   :  { %v444_v53 = vpop.f32.mrb[2].mxu1 }
 0x3c0   :  { %v445_v54 = vadd.f32 %v444_v53, %v368_v51  ;;  %v446_v55 = vpop.f32.mrb[3].mxu1 }
 0x3c1   :  { %v447_v56 = vadd.f32 %v446_v55, %v372_v52 }
 0x3c2   :  { %449 = vst [vmem:[#allocation11] sm:$0xff] %v445_v54 }
 0x3c3   :  { %450 = vst [vmem:[#allocation11 + $0x8] sm:$0xff] %v447_v56 }
 0x3c4   :  { %668 = shalt.err (!%p665_p2)
}
 0x3c5   :  { %s669_s14 = scalar_lea.hbm %s852_s9, 256 }
 0x3c6   :  { %p670_p3 = scmp.ne.s32.totalorder %s852_s9, %s669_s14  ;;  %p673_p4 = scmp.lt.u32.totalorder %s669_s14, %s852_s9 }
 0x3c8   :  { %p675_p5 = pnand %p673_p4, %p670_p3 }
 0x3ca   :  { %678 = shalt.err (!%p675_p5)
}
 0x3cb   :  { %460 = dma.vmem_to_hbm [thread:$0]  %s458_s1, 256, %s852_s9, [#allocation4]  }
 0x3cc   :  { %685 = dma.done.wait [#allocation4], 256  }
 0x3cd   :  { %686 = vsyncadd [#allocation4], 4294967040 }
 0x3ce   :  { %464 = vsyncpa [#allocation3], 1 }
 0x3cf   :  { %465 = vsyncpa [#allocation6], 1 }
 0x3d0   :  { %466 = vsyncpa [#allocation9], 1 }
 0x3d1   :  { %467 = vsyncpa [#allocation4], 1 }

</bundles_post_ra>
